<compile_context>
chip_gen: v6e
topology: v6e:2x2x1
jax: 0.10.0
libtpu: 0.0.40
codegen_flags: <defaults>
</compile_context>

<pallas_src>
import math

import jax
import jax.numpy as jnp
from jax.experimental import pallas as pl
from jax.experimental.pallas import tpu as pltpu


def _sublane_multiple(dtype) -> int:
    """Minimum second-to-last tile multiple for this dtype's sublane packing."""
    itemsize = jnp.dtype(dtype).itemsize
    if itemsize >= 4:
        return 8          # f32 / i32
    return 32 // itemsize  # bf16 -> 16, int8/fp8 -> 32


def _largest_divisor_tile(extent, unit, max_tile):
    """Largest divisor of `extent` that is a multiple of `unit` and <= max_tile.

    Returns None when no such divisor exists (caller keeps the full extent,
    which always satisfies the hardware tiling constraint)."""
    if extent % unit != 0:
        return None
    best = None
    tile = unit
    limit = min(extent, max_tile)
    while tile <= limit:
        if extent % tile == 0:
            best = tile
        tile += unit
    return best


def pallas_permute(x, perm, *, target_block_bytes=2 << 20):
    """Pallas equivalent of `x.permute(*perm)` (torch) / jnp.transpose(x, perm)."""
    perm = tuple(int(p) for p in perm)
    ndim = x.ndim
    if sorted(perm) != list(range(ndim)):
        raise ValueError(f"invalid permutation {perm} for rank {ndim}")
    if ndim <= 1 or perm == tuple(range(ndim)):
        # Identity permute: torch returns a view; no data movement required.
        return x

    out_shape = tuple(x.shape[p] for p in perm)
    itemsize = jnp.dtype(x.dtype).itemsize
    sub_mult = _sublane_multiple(x.dtype)

    # Axes that land in the lane (last) position of the input or output block
    # must stay dense; axes that land in a sublane (second-to-last) position
    # must be full-extent or tiled in packing multiples — never gridded to 1.
    lane_axes = {ndim - 1, perm[-1]}
    sublane_axes = {ndim - 2, perm[-2]} - lane_axes

    blk = [1] * ndim
    for a in lane_axes | sublane_axes:
        blk[a] = x.shape[a]

    def block_bytes():
        return math.prod(blk) * itemsize

    def shrink(axis, unit):
        other = (math.prod(blk) // blk[axis]) * itemsize
        max_tile = max(unit, target_block_bytes // max(other, 1))
        tile = _largest_divisor_tile(x.shape[axis], unit, max_tile)
        if tile is not None:
            blk[axis] = tile

    if block_bytes() > target_block_bytes:
        # Shrink sublane axes first (dtype packing multiples), then lane axes
        # (multiples of 128 so loads/stores stay unmasked and lane-dense).
        for a in sorted(sublane_axes, key=lambda a: -x.shape[a]):
            if block_bytes() <= target_block_bytes:
                break
            shrink(a, sub_mult)
        for a in sorted(lane_axes, key=lambda a: -x.shape[a]):
            if block_bytes() <= target_block_bytes:
                break
            shrink(a, 128)

    keep = sorted(lane_axes | sublane_axes)          # axes visible to the kernel
    squeeze = [a for a in range(ndim) if a not in keep]  # gridded, size-1 axes

    # Grid over every axis that needs more than one block; all independent.
    grid_axes = [a for a in range(ndim) if pl.cdiv(x.shape[a], blk[a]) > 1]
    grid = tuple(pl.cdiv(x.shape[a], blk[a]) for a in grid_axes)
    axis_to_gid = {a: i for i, a in enumerate(grid_axes)}

    def in_index_map(*gids):
        return tuple(gids[axis_to_gid[a]] if a in axis_to_gid else 0
                     for a in range(ndim))

    def out_index_map(*gids):
        return tuple(gids[axis_to_gid[perm[j]]] if perm[j] in axis_to_gid else 0
                     for j in range(ndim))

    in_block = tuple(None if a in squeeze else blk[a] for a in range(ndim))
    out_block = tuple(None if perm[j] in squeeze else blk[perm[j]]
                      for j in range(ndim))

    # Permutation induced on the axes the kernel actually sees.
    out_view_srcs = [perm[j] for j in range(ndim) if perm[j] in keep]
    kperm = tuple(keep.index(s) for s in out_view_srcs)

    if kperm == tuple(range(len(kperm))):
        # DMA index maps already realize the whole permutation: pure copy.
        def kernel(x_ref, o_ref):
            o_ref[...] = x_ref[...]
    else:
        def kernel(x_ref, o_ref):
            # Only the minor-axis relayout happens on-chip (XLU); major axes
            # were reordered by the DMA addressing via the index maps.
            o_ref[...] = jnp.transpose(x_ref[...], kperm)

    if not grid:                      # whole array fits in a single block
        grid = (1,)
        dim_sem = ("arbitrary",)
    else:
        dim_sem = ("parallel",) * len(grid)

    # Deeper pipelining only if awkward shapes force small per-step blocks.
    n_steps = math.prod(grid)
    buffered_in = block_bytes() < (512 << 10) and n_steps >= 8

    def make_spec(shape, imap, buffered):
        if buffered:
            try:
                return pl.BlockSpec(shape, imap, pipeline_mode=pl.Buffered(3))
            except TypeError:         # older jax without pipeline_mode kwarg
                pass
        return pl.BlockSpec(shape, imap)

    # Generation-aware scoped-VMEM request: 2 in + 2 out buffers + headroom,
    # capped below physical capacity (64 MiB per TensorCore on v7x).
    needed = 4 * block_bytes() + (4 << 20)
    try:
        vmem_cap = int(pltpu.get_tpu_info().vmem_capacity_bytes)
    except Exception:
        vmem_cap = 64 << 20
    vmem_limit = int(min(max(needed, 32 << 20), int(vmem_cap * 0.9)))

    return pl.pallas_call(
        kernel,
        out_shape=jax.ShapeDtypeStruct(out_shape, x.dtype),
        grid_spec=pltpu.PrefetchScalarGridSpec(
            num_scalar_prefetch=0,
            grid=grid,
            in_specs=[make_spec(in_block, in_index_map, buffered_in)],
            out_specs=make_spec(out_block, out_index_map, False),
        ),
        compiler_params=pltpu.CompilerParams(
            dimension_semantics=dim_sem,
            vmem_limit_bytes=vmem_limit,
        ),
    )(x)


class Permute:
    """JAX/Pallas mirror of the PyTorch `Permute` nn.Module (no parameters)."""

    def __init__(self, *args):
        self.args = tuple(int(a) for a in args)

    def __call__(self, x):
        return pallas_permute(x, self.args)


if __name__ == "__main__":
    key = jax.random.PRNGKey(0)
    # Small NCHW input consistent with how CrackMamba uses Permute around convs.
    B, C, H, W = 2, 4, 16, 16
    x = jax.random.normal(key, (B, C, H, W), dtype=jnp.float32)

    # NCHW -> NHWC (Permute(0, 2, 3, 1)) and its inverse NHWC -> NCHW.
    perm_nhwc = Permute(0, 2, 3, 1)
    perm_nchw = Permute(0, 3, 1, 2)

    y = perm_nhwc(x)
    jax.block_until_ready(y)
    z = perm_nchw(y)
    jax.block_until_ready(z)

    ref_y = jnp.transpose(x, (0, 2, 3, 1))
    assert y.shape == (B, H, W, C), y.shape
    assert z.shape == (B, C, H, W), z.shape
    assert jnp.array_equal(y, ref_y), "permute mismatch vs reference"
    assert jnp.array_equal(z, x), "round-trip permute mismatch"

    # Also exercise the pure-copy path (minor axes preserved; DMA does the
    # whole permutation): (B, C, H, W) -> (C, B, H, W).
    w = Permute(1, 0, 2, 3)(x)
    jax.block_until_ready(w)
    assert w.shape == (C, B, H, W), w.shape
    assert jnp.array_equal(w, jnp.transpose(x, (1, 0, 2, 3))), "copy-path mismatch"

    print("KERNEL_OK")
</pallas_src>

<mosaic_0001>
module attributes {stable_mosaic.version = 11 : i64} {
  func.func @kernel(%arg0: i32, %arg1: memref<1x4x16x16xf32, #tpu.memory_space<vmem>>, %arg2: memref<1x16x16x4xf32, #tpu.memory_space<vmem>>) attributes {dimension_semantics = [#tpu.dimension_semantics<parallel>], iteration_bounds = array<i64: 2>, scalar_prefetch = 0 : i64, scratch_operands = 0 : i64, tpu.core_type = #tpu.core_type<tc>, window_params = [{transform_indices = @transform_0, window_bounds = array<i64: 1, 4, 16, 16>}, {transform_indices = @transform_1, window_bounds = array<i64: 1, 16, 16, 4>}]} {
    %c0 = arith.constant 0 : index
    %c0_0 = arith.constant 0 : index
    %c0_1 = arith.constant 0 : index
    %c0_2 = arith.constant 0 : index
    %0 = vector.load %arg1[%c0, %c0_0, %c0_1, %c0_2] : memref<1x4x16x16xf32, #tpu.memory_space<vmem>>, vector<1x4x16x16xf32>
    %1 = vector.shape_cast %0 : vector<1x4x16x16xf32> to vector<4x16x16xf32>
    %2 = tpu.transpose %1, [1, 2, 0] : vector<4x16x16xf32> -> vector<16x16x4xf32>
    %c0_3 = arith.constant 0 : index
    %c0_4 = arith.constant 0 : index
    %c0_5 = arith.constant 0 : index
    %c0_6 = arith.constant 0 : index
    %3 = vector.load %arg2[%c0_3, %c0_4, %c0_5, %c0_6] : memref<1x16x16x4xf32, #tpu.memory_space<vmem>>, vector<1x16x16x4xf32>
    %4 = vector.shape_cast %3 : vector<1x16x16x4xf32> to vector<16x16x4xf32>
    %5 = vector.shape_cast %2 : vector<16x16x4xf32> to vector<1x16x16x4xf32>
    tpu.vector_store %arg2[%c0_3, %c0_4, %c0_5, %c0_6], %5 {strides = array<i32>} : memref<1x16x16x4xf32, #tpu.memory_space<vmem>>, vector<1x16x16x4xf32>,
    return
  }
  func.func @transform_0(%arg0: i32) -> (i32, i32, i32, i32) {
    %c0_i32 = arith.constant 0 : i32
    %c0_i32_0 = arith.constant 0 : i32
    %c0_i32_1 = arith.constant 0 : i32
    %c0_i32_2 = arith.constant 0 : i32
    return %arg0, %c0_i32, %c0_i32_0, %c0_i32_1 : i32, i32, i32, i32
  }
  func.func @transform_1(%arg0: i32) -> (i32, i32, i32, i32) {
    %c0_i32 = arith.constant 0 : i32
    %c0_i32_0 = arith.constant 0 : i32
    %c0_i32_1 = arith.constant 0 : i32
    %c0_i32_2 = arith.constant 0 : i32
    return %arg0, %c0_i32, %c0_i32_0, %c0_i32_1 : i32, i32, i32, i32
  }
}

</mosaic_0001>

<bundles_post_ra>
// kernel: tpu_custom_call.1
= control target key start
LH: loop header
LB: loop body
LE: loop exit
PB: predicated region body
PF: predicated region fallthrough
CT: control target
= control target key end

     0   :  { %6 = vsyncpa [#allocation3], 0  ;;  %s1971_s0 = inlined_call_operand.hbm [shape: f32[2,4,16,16], index: 0, kind: input, shape index: {}]   ;;  %s1972_s1 = inlined_call_operand.vmem [shape: f32[2,16,16,4], index: 1, kind: output, shape index: {}]  }
   0x1   :  { %8 = vsyncpa [#allocation3 + $0x1], 0  ;;  %s1703_s6 = smov 0   ;;  %s1705_s7 = smov 0  }
   0x2   :  { %s1707_s8 = smov 0   ;;  %s1709_s9 = smov 0  }
   0x3 LB: > { %s1722_s10 = sadd.s32 4294967295, %s1685_s9   ;;  %s1725_s11 = sadd.s32 1, %s1685_s9   ;;  %s1685_s9 = sphi %s1709_s9, %s1981_s9   ;;  %s1681_s8 = sphi %s1707_s8, %s1980_s8   ;;  %s1677_s7 = sphi %s1705_s7, %s1979_s7   ;;  %s1673_s6 = sphi %s1703_s6, %s1978_s6  }
   0x4   : > { %s18_s12 = ssub.s32 %s1685_s9, %s1725_s11  ;;  %s21_s13 = sadd.s32 1, %s1681_s8 }
   0x5   : > { %p19_p0 = scmp.eq.s32.totalorder %s18_s12, 0  ;;  %p28_p1 = scmp.ne.s32.totalorder %s1681_s8, %s1677_s7 }
   0x6   : > { %p29_p2 = scmp.eq.s32.totalorder %s1685_s9, 0  ;;  %p34_p3 = scmp.ne.s32.totalorder %s1677_s7, %s1673_s6 }
   0x7   : > { %s1735_s14 = scalar_select %p19_p0, %s1681_s8, %s21_s13  }
   0x8   : > { %p30_p4 = por %p29_p2, %p28_p1  ;;  %p35_p5 = scmp.eq.s32.totalorder %s1722_s10, 0 }
   0x9   : > { %p1585_p6 = scmp.lt.s32.totalorder %s1685_s9, 2  ;;  %s84_s16 = sand.u32 1, %s1681_s8  }
   0xa   : > { %p1739_p7 = por %p35_p5, %p34_p3  ;;  %s1568_s17 = sshll.u32 %s84_s16, 6 }
   0xb   : > { %s1577_s18 = sshll.u32 %s1685_s9, 10  ;;  %s88_s22 = scalar_lea.vmem [#allocation2], %s1568_s17 }
   0xc   : > { %s1974_s15 = scalar_select %p1739_p7, 1, 0 }
   0xd   : > { %s1748_s21 = scalar_lea.hbm %s1971_s0, %s1577_s18  ;;  %s95_s23 = sshll.u32 %s88_s22, 4  ;;  %s1750_s23 = int_to_ptr.vmem [resolvable:$true] %s95_s23 }
   0xe   : > { %p1752_p8 = pnand %p1585_p6, %p30_p4  ;;  %s1757_s25 = scalar_lea.sflag [#allocation3], %s84_s16 }
   0xf   : > { %s1623_s26 = scalar_lea.hbm %s1748_s21, 1024  ;;  %s1628_s29 = scalar_lea.hbm %s1971_s0, 2048 }
  0x10   : > { %p1624_p10 = scmp.ne.s32.totalorder %s1748_s21, %s1623_s26  ;;  %p1625_p11 = pneg %p1752_p8 }
  0x11   : > { %p1629_p0 = scmp.lt.s32.totalorder %s1748_s21, %s1971_s0  ;;  %p1630_p1 = scmp.lt.s32.totalorder %s1628_s29, %s1623_s26 }
  0x12   : > { %p1626_p12 = pnand %p1625_p11, %p1624_p10 }
  0x13   : > { %p1631_p2 = por %p1630_p1, %p1629_p0 }
  0x14   : > { %p1627_p13 = pneg %p1626_p12 }
  0x16   : > { %p1632_p3 = pnand %p1631_p2, %p1627_p13 }
  0x18   : > { %1635 = shalt.err (!%p1632_p3)
}
  0x19   : > { %s1636_s3 = scalar_lea.vmem %s1750_s23, 1024  ;;  %s1687_s4 = smov [#allocation2]  }
  0x1a   : > { %p1637_p4 = scmp.ne.s32.totalorder %s1750_s23, %s1636_s3  ;;  %s1641_s5 = sshll.u32 %s1687_s4, 4  ;;  %s1642_s5 = int_to_ptr.vmem [resolvable:$false] %s1641_s5 }
  0x1b   : > { %s1643_s6 = scalar_lea.vmem %s1642_s5, 2048  ;;  %p1644_p10 = scmp.lt.s32.totalorder %s1750_s23, %s1642_s5 }
  0x1c   : > { %p1639_p5 = pnand %p1637_p4, %p1625_p11  ;;  %p1645_p12 = scmp.lt.s32.totalorder %s1643_s6, %s1636_s3 }
  0x1e   : > { %p1640_p6 = pneg %p1639_p5  ;;  %p1646_p9 = por %p1645_p12, %p1644_p10 }
  0x20   : > { %p1647_p7 = pnand %p1646_p9, %p1640_p6 }
  0x22   : > { %1650 = shalt.err (!%p1647_p7)
}
  0x23   : > { %s1688_s12 = smov 128   ;;  %s1689_s13 = smov 8  }
  0x24   : > { %1584 = dma.hbm_to_vmem [thread:$0]  (!%p1752_p8), %s1748_s21, 1024, %s1750_s23, %s1757_s25, %s1688_s12, %s1688_s12, %s1689_s13  }
  0x25   : > { %p103_p11 = scmp.lt.s32.totalorder %s1685_s9, 3  ;;  %p1976_p13 = scmp.ge.s32.totalorder %s1685_s9, 1 }
  0x27   : > { %p104_p0 = pnand %p1976_p13, %p103_p11 }
  0x28   : > { %s109_s16 = sand.u32 (!%p104_p0), 1, %s1677_s7   ;;  %p1977_p7 = scmp.ne.s32.totalorder (!%p104_p0), %s1974_s15, 0 }
  0x29   : > { %107 = sbr.rel (%p104_p0) target bundleno = 392 (0x188), region = 24  ;;  %s1572_s17 = sshll.u32 (!%p104_p0), %s109_s16, 6 }
  0x2a   : > { %s110_s18 = scalar_lea.sflag (!%p104_p0), [#allocation3], %s109_s16  ;;  %s113_s19 = scalar_lea.vmem (!%p104_p0), [#allocation2], %s1572_s17 }
  0x2e   : > { %1668 = dma.done.wait (%p1977_p7), %s110_s18, 1024  }
  0x2f   : > { %1670 = vsyncadd (%p1977_p7), %s110_s18, 4294966272  ;;  %v139_v0 = vld [vmem:[%s113_s19 + $0x10] sm:$0xff]  ;;  %v137_v1 = vld [vmem:[%s113_s19] sm:$0xff]  ;;  %v1690_v8 = vmov 1983009808   ;;  %v278_v10 = vlaneseq  ;;  %v1692_v35 = vmov 0.0  }
  0x30   : > { %177 = vxpose.xlu1.b32.start [1/2] (short) (narrow) %v139_v0, 16  ;;  %145 = vxpose.xlu0.b32.start [1/2] (short) (narrow) %v137_v1, 16  ;;  %v140_v2 = vld [vmem:[%s113_s19 + $0x18] sm:$0xff]  ;;  %v138_v3 = vld [vmem:[%s113_s19 + $0x8] sm:$0xff]  ;;  %v143_v4 = vld [vmem:[%s113_s19 + $0x30] sm:$0xff]  ;;  %v276_v9 = vunpack.c.l.s4 %v1690_v8  ;;  %p132_p8 = scmp.lt.s32.totalorder %s1722_s10, 1 }
  0x31   : > { %v141_v5 = vld [vmem:[%s113_s19 + $0x20] sm:$0xff]  ;;  %v144_v6 = vld [vmem:[%s113_s19 + $0x38] sm:$0xff]  ;;  %v142_v7 = vld [vmem:[%s113_s19 + $0x28] sm:$0xff]  ;;  %v279_v14 = vshrl.u32 %v278_v10, 7  ;;  %v1691_v17 = vmov 1934713408  }
  0x32   : > { %v277_v13 = vunpack.c.0.s8 %v276_v9  ;;  %v308_v18 = vunpack.c.l.s4 %v1691_v17  ;;  %vm1465_vm0 = vcmask 31744   ;;  %s1983_s10 = smov (!%p132_p8, %s1722_s10), 1 }
  0x33   : > { %s1578_s9 = sshll.u32 %s1983_s10, 8 }
  0x34   : > { %178 = vxpose.xlu1.b32.end [2/2] (short) (narrow) %v140_v2, 16  ;;  %146 = vxpose.xlu0.b32.end [2/2] (short) (narrow) %v138_v3, 16  ;;  %v1786_v19 = vsub.s32 %v277_v13, %v279_v14  ;;  %v309_v22 = vunpack.c.0.s8 %v308_v18  ;;  %s1842_s20 = scalar_lea.vmem %s1972_s1, %s1578_s9 }
  0x36   : > { %v1790_v29 = vsub.s32 %v309_v22, %v279_v14 }
  0x38   : > { %241 = vxpose.xlu1.b32.start [1/2] (short) (narrow) %v143_v4, 16  ;;  %209 = vxpose.xlu0.b32.start [1/2] (short) (narrow) %v141_v5, 16 }
  0x3c   : > { %242 = vxpose.xlu1.b32.end [2/2] (short) (narrow) %v144_v6, 16  ;;  %210 = vxpose.xlu0.b32.end [2/2] (short) (narrow) %v142_v7, 16 }
  0xac   : > { %v193_v11 = vpop.trf.xlu1  ;;  %v161_v12 = vpop.trf.xlu0 }
  0xb0   : > { %v194_v15 = vpop.trf.xlu1  ;;  %v162_v16 = vpop.trf.xlu0 }
  0xb4   : > { %v257_v20 = vpop.trf.xlu1  ;;  %v225_v21 = vpop.trf.xlu0 }
  0xb5   : > { %v289_v23 = vcombine.low %v193_v11, %v257_v20  ;;  %v273_v24 = vcombine.low %v161_v12, %v225_v21  ;;  %v290_v27 = vcombine.high %v193_v11, %v257_v20  ;;  %v274_v28 = vcombine.high %v161_v12, %v225_v21 }
  0xb7   : > { %v297_v25 = vrot.slane %v289_v23, %v1786_v19  ;;  %v281_v26 = vrot.slane %v273_v24, %v1786_v19  ;;  %v304_v32 = vrot.slane %v290_v27, %v1786_v19  ;;  %v288_v33 = vrot.slane %v274_v28, %v1786_v19 }
  0xb8   : > { %v258_v37 = vpop.trf.xlu1  ;;  %v226_v38 = vpop.trf.xlu0 }
  0xb9   : > { %v305_v30 = vcombine.low %v281_v26, %v297_v25  ;;  %v306_v31 = vcombine.high %v281_v26, %v297_v25  ;;  %v321_v40 = vcombine.low %v288_v33, %v304_v32  ;;  %v357_v41 = vcombine.low %v194_v15, %v258_v37 }
  0xba   : > { %v341_v42 = vcombine.low %v162_v16, %v226_v38  ;;  %v322_v45 = vcombine.high %v288_v33, %v304_v32  ;;  %v358_v51 = vcombine.high %v194_v15, %v258_v37  ;;  %v342_v52 = vcombine.high %v162_v16, %v226_v38 }
  0xbb   : > { %v313_v34 = vrot.slane %v305_v30, %v1790_v29  ;;  %v320_v39 = vrot.slane %v306_v31, %v1790_v29  ;;  %v329_v44 = vrot.slane %v321_v40, %v1790_v29  ;;  %v365_v46 = vrot.slane %v357_v41, %v1786_v19 }
  0xbc   : > { %v349_v47 = vrot.slane %v341_v42, %v1786_v19  ;;  %v336_v49 = vrot.slane %v322_v45, %v1790_v29  ;;  %v372_v56 = vrot.slane %v358_v51, %v1786_v19  ;;  %v356_v57 = vrot.slane %v342_v52, %v1786_v19 }
  0xbd   : > { %409 = vxpose.xlu0.b32.start.end [1/1] (short) (narrow) %v313_v34, 16  ;;  %v337_v36 = vcombine.high %v313_v34, %v1692_v35  ;;  %v338_v43 = vcombine.high %v320_v39, %v1692_v35  ;;  %v339_v48 = vcombine.high %v329_v44, %v1692_v35 }
  0xbe   : > { %v373_v50 = vcombine.low %v349_v47, %v365_v46  ;;  %v340_v53 = vcombine.high %v336_v49, %v1692_v35  ;;  %v374_v55 = vcombine.high %v349_v47, %v365_v46  ;;  %v389_v60 = vcombine.low %v356_v57, %v372_v56 }
  0xbf   : > { %441 = vxpose.xlu1.b32.start.end [1/1] (short) (narrow) %v337_v36, 16  ;;  %v390_v63 = vcombine.high %v356_v57, %v372_v56 }
  0xc0   : > { %v381_v54 = vrot.slane %v373_v50, %v1790_v29  ;;  %v388_v59 = vrot.slane %v374_v55, %v1790_v29  ;;  %v397_v62 = vrot.slane %v389_v60, %v1790_v29 }
  0xc1   : > { %v404_v1 = vrot.slane %v390_v63, %v1790_v29 }
  0xc2   : > { %473 = vxpose.xlu0.b32.start.end [1/1] (short) (narrow) %v320_v39, 16  ;;  %v405_v58 = vcombine.high %v381_v54, %v1692_v35  ;;  %v406_v61 = vcombine.high %v388_v59, %v1692_v35  ;;  %v407_v0 = vcombine.high %v397_v62, %v1692_v35 }
  0xc3   : > { %v408_v2 = vcombine.high %v404_v1, %v1692_v35 }
  0xc4   : > { %505 = vxpose.xlu1.b32.start.end [1/1] (short) (narrow) %v338_v43, 16 }
  0xc7   : > { %537 = vxpose.xlu0.b32.start.end [1/1] (short) (narrow) %v329_v44, 16 }
  0xc9   : > { %569 = vxpose.xlu1.b32.start.end [1/1] (short) (narrow) %v339_v48, 16 }
  0xcc   : > { %601 = vxpose.xlu0.b32.start.end [1/1] (short) (narrow) %v336_v49, 16 }
  0xce   : > { %633 = vxpose.xlu1.b32.start.end [1/1] (short) (narrow) %v340_v53, 16 }
  0xd1   : > { %665 = vxpose.xlu0.b32.start.end [1/1] (short) (narrow) %v381_v54, 16 }
  0xd3   : > { %697 = vxpose.xlu1.b32.start.end [1/1] (short) (narrow) %v405_v58, 16 }
  0xd6   : > { %729 = vxpose.xlu0.b32.start.end [1/1] (short) (narrow) %v388_v59, 16 }
  0xd8   : > { %761 = vxpose.xlu1.b32.start.end [1/1] (short) (narrow) %v406_v61, 16 }
  0xdb   : > { %793 = vxpose.xlu0.b32.start.end [1/1] (short) (narrow) %v397_v62, 16 }
  0xdd   : > { %825 = vxpose.xlu1.b32.start.end [1/1] (short) (narrow) %v407_v0, 16 }
  0xe0   : > { %857 = vxpose.xlu0.b32.start.end [1/1] (short) (narrow) %v404_v1, 16 }
  0xe2   : > { %889 = vxpose.xlu1.b32.start.end [1/1] (short) (narrow) %v408_v2, 16 }
 0x139   : > { %v425_v3 = vpop.trf.xlu0 }
 0x13b   : > { %v457_v4 = vpop.trf.xlu1 }
 0x13d   : > { %v426_v5 = vpop.trf.xlu0 }
 0x13f   : > { %v458_v6 = vpop.trf.xlu1 }
 0x141   : > { %v489_v7 = vpop.trf.xlu0 }
 0x142   : > { %v921_v14 = vcombine.low %v425_v3, %v489_v7  ;;  %v922_v15 = vcombine.high %v425_v3, %v489_v7 }
 0x143   : > { %v521_v8 = vpop.trf.xlu1 }
 0x144   : > { %v937_v11 = vcombine.low %v457_v4, %v521_v8  ;;  %v938_v12 = vcombine.high %v457_v4, %v521_v8  ;;  %v929_v21 = vrot.slane %v921_v14, %v1786_v19  ;;  %v936_v22 = vrot.slane %v922_v15, %v1786_v19 }
 0x145   : > { %v490_v9 = vpop.trf.xlu0 }
 0x146   : > { %v945_v17 = vrot.slane %v937_v11, %v1786_v19  ;;  %v952_v18 = vrot.slane %v938_v12, %v1786_v19  ;;  %v1193_v23 = vcombine.low %v426_v5, %v490_v9  ;;  %v1194_v27 = vcombine.high %v426_v5, %v490_v9 }
 0x147   : > { %v522_v10 = vpop.trf.xlu1 }
 0x148   : > { %v1209_v24 = vcombine.low %v458_v6, %v522_v10  ;;  %v985_v26 = vcombine.low %v929_v21, %v945_v17  ;;  %v986_v28 = vcombine.high %v929_v21, %v945_v17  ;;  %v1001_v30 = vcombine.low %v936_v22, %v952_v18 }
 0x149   : > { %v553_v13 = vpop.trf.xlu0  ;;  %v1002_v31 = vcombine.high %v936_v22, %v952_v18  ;;  %v1210_v32 = vcombine.high %v458_v6, %v522_v10  ;;  %v1201_v36 = vrot.slane %v1193_v23, %v1786_v19  ;;  %v1815_v40 = vrot.slane %v1194_v27, %v1786_v19 }
 0x14a   : > { %v1217_v37 = vrot.slane %v1209_v24, %v1786_v19  ;;  %v993_v39 = vrot.slane %v985_v26, %v1790_v29  ;;  %v1000_v43 = vrot.slane %v986_v28, %v1790_v29  ;;  %v1009_v44 = vrot.slane %v1001_v30, %v1790_v29 }
 0x14b   : > { %v585_v16 = vpop.trf.xlu1  ;;  %v1016_v45 = vrot.slane %v1002_v31, %v1790_v29  ;;  %v1224_v46 = vrot.slane %v1210_v32, %v1786_v19 }
 0x14c   : > { %v1257_v52 = vcombine.low %v1201_v36, %v1217_v37  ;;  %v1258_v53 = vcombine.high %v1201_v36, %v1217_v37 }
 0x14d   : > { %v554_v20 = vpop.trf.xlu0  ;;  %v1273_v61 = vcombine.low %v1815_v40, %v1224_v46  ;;  %v1274_v62 = vcombine.high %v1815_v40, %v1224_v46 }
 0x14e   : > { %v1272_v26 = vrot.slane %v1258_v53, %v1790_v29 }
 0x14f   : > { %v586_v25 = vpop.trf.xlu1 }
 0x151   : > { %v617_v33 = vpop.trf.xlu0 }
 0x152   : > { %v953_v34 = vcombine.low %v553_v13, %v617_v33  ;;  %v954_v35 = vcombine.high %v553_v13, %v617_v33  ;;  %v1281_v33 = vrot.slane %v1273_v61, %v1790_v29 }
 0x153   : > { %v649_v38 = vpop.trf.xlu1 }
 0x154   : > { %v969_v41 = vcombine.low %v585_v16, %v649_v38  ;;  %v970_v42 = vcombine.high %v585_v16, %v649_v38  ;;  %v961_v48 = vrot.slane %v953_v34, %v1786_v19  ;;  %v968_v49 = vrot.slane %v954_v35, %v1786_v19 }
 0x155   : > { %v618_v47 = vpop.trf.xlu0  ;;  %v1288_v34 = vrot.slane %v1274_v62, %v1790_v29 }
 0x156   : > { %v977_v50 = vrot.slane %v969_v41, %v1786_v19  ;;  %v984_v51 = vrot.slane %v970_v42, %v1786_v19  ;;  %v1225_v54 = vcombine.low %v554_v20, %v618_v47  ;;  %v1226_v55 = vcombine.high %v554_v20, %v618_v47 }
 0x157   : > { %v650_v56 = vpop.trf.xlu1 }
 0x158   : > { %v1017_v57 = vcombine.low %v961_v48, %v977_v50  ;;  %v1018_v58 = vcombine.high %v961_v48, %v977_v50  ;;  %v1033_v59 = vcombine.low %v968_v49, %v984_v51  ;;  %v1034_v60 = vcombine.high %v968_v49, %v984_v51 }
 0x159   : > { %v1241_v63 = vcombine.low %v586_v25, %v650_v56  ;;  %v1242_v0 = vcombine.high %v586_v25, %v650_v56  ;;  %v1833_v1 = vpop.trf.xlu0  ;;  %v1233_v6 = vrot.slane %v1225_v54, %v1786_v19  ;;  %v1240_v7 = vrot.slane %v1226_v55, %v1786_v19 }
 0x15a   : > { %v1025_v2 = vrot.slane %v1017_v57, %v1790_v29  ;;  %v1032_v3 = vrot.slane %v1018_v58, %v1790_v29  ;;  %v1041_v4 = vrot.slane %v1033_v59, %v1790_v29  ;;  %v1048_v5 = vrot.slane %v1034_v60, %v1790_v29 }
 0x15b   : > { %v1249_v8 = vrot.slane %v1241_v63, %v1786_v19  ;;  %v1256_v9 = vrot.slane %v1242_v0, %v1786_v19  ;;  %v713_v10 = vpop.trf.xlu1  ;;  %v1265_v25 = vrot.slane %v1257_v52, %v1790_v29 }
 0x15c   : > { %v1049_v11 = vcombine.low %v993_v39, %v1025_v2  ;;  %v1050_v12 = vcombine.high %v993_v39, %v1025_v2  ;;  %v1051_v13 = vcombine.low %v1000_v43, %v1032_v3  ;;  %v1052_v14 = vcombine.high %v1000_v43, %v1032_v3 }
 0x15d   : > { %v1053_v15 = vcombine.low %v1009_v44, %v1041_v4  ;;  %v1054_v16 = vcombine.high %v1009_v44, %v1041_v4  ;;  %v1055_v17 = vcombine.low %v1016_v45, %v1048_v5  ;;  %v1056_v18 = vcombine.high %v1016_v45, %v1048_v5  ;;  %v1848_v20 = vpop.trf.xlu0 }
 0x15e   : > { %1466 = vst.msk [vmem:[%s1842_s20] sm:$0xff] %vm1465_vm0, %v1049_v11  ;;  %1468 = vst.msk [vmem:[%s1842_s20 + $0x10] sm:$0xff] %vm1465_vm0, %v1050_v12  ;;  %v1289_v21 = vcombine.low %v1233_v6, %v1249_v8  ;;  %v1290_v22 = vcombine.high %v1233_v6, %v1249_v8  ;;  %v1305_v23 = vcombine.low %v1240_v7, %v1256_v9 }
 0x15f   : > { %1470 = vst.msk [vmem:[%s1842_s20 + $0x20] sm:$0xff] %vm1465_vm0, %v1051_v13  ;;  %1472 = vst.msk [vmem:[%s1842_s20 + $0x30] sm:$0xff] %vm1465_vm0, %v1052_v14  ;;  %v1306_v24 = vcombine.high %v1240_v7, %v1256_v9  ;;  %v714_v27 = vpop.trf.xlu1 }
 0x160   : > { %1474 = vst.msk [vmem:[%s1842_s20 + $0x40] sm:$0xff] %vm1465_vm0, %v1053_v15  ;;  %1476 = vst.msk [vmem:[%s1842_s20 + $0x50] sm:$0xff] %vm1465_vm0, %v1054_v16  ;;  %v1297_v28 = vrot.slane %v1289_v21, %v1790_v29  ;;  %v1304_v30 = vrot.slane %v1290_v22, %v1790_v29  ;;  %v1313_v31 = vrot.slane %v1305_v23, %v1790_v29 }
 0x161   : > { %1478 = vst.msk [vmem:[%s1842_s20 + $0x60] sm:$0xff] %vm1465_vm0, %v1055_v17  ;;  %1480 = vst.msk [vmem:[%s1842_s20 + $0x70] sm:$0xff] %vm1465_vm0, %v1056_v18  ;;  %v1320_v32 = vrot.slane %v1306_v24, %v1790_v29  ;;  %v745_v35 = vpop.trf.xlu0 }
 0x162   : > { %v1321_v36 = vcombine.low %v1265_v25, %v1297_v28  ;;  %v1322_v37 = vcombine.high %v1265_v25, %v1297_v28  ;;  %v1323_v38 = vcombine.low %v1272_v26, %v1304_v30  ;;  %v1324_v39 = vcombine.high %v1272_v26, %v1304_v30 }
 0x163   : > { %v1325_v40 = vcombine.low %v1281_v33, %v1313_v31  ;;  %v1326_v41 = vcombine.high %v1281_v33, %v1313_v31  ;;  %v1327_v42 = vcombine.low %v1288_v34, %v1320_v32  ;;  %v1328_v43 = vcombine.high %v1288_v34, %v1320_v32  ;;  %v777_v44 = vpop.trf.xlu1 }
 0x164   : > { %1482 = vst.msk [vmem:[%s1842_s20 + $0x80] sm:$0xff] %vm1465_vm0, %v1321_v36  ;;  %1484 = vst.msk [vmem:[%s1842_s20 + $0x90] sm:$0xff] %vm1465_vm0, %v1322_v37  ;;  %v1073_v47 = vcombine.low %v713_v10, %v777_v44  ;;  %v1074_v48 = vcombine.high %v713_v10, %v777_v44  ;;  %v1057_v50 = vcombine.low %v1833_v1, %v745_v35 }
 0x165   : > { %1486 = vst.msk [vmem:[%s1842_s20 + $0xa0] sm:$0xff] %vm1465_vm0, %v1323_v38  ;;  %1488 = vst.msk [vmem:[%s1842_s20 + $0xb0] sm:$0xff] %vm1465_vm0, %v1324_v39  ;;  %v746_v45 = vpop.trf.xlu0  ;;  %v1058_v51 = vcombine.high %v1833_v1, %v745_v35 }
 0x166   : > { %1490 = vst.msk [vmem:[%s1842_s20 + $0xc0] sm:$0xff] %vm1465_vm0, %v1325_v40  ;;  %1492 = vst.msk [vmem:[%s1842_s20 + $0xd0] sm:$0xff] %vm1465_vm0, %v1326_v41  ;;  %v1081_v53 = vrot.slane %v1073_v47, %v1786_v19  ;;  %v1088_v54 = vrot.slane %v1074_v48, %v1786_v19  ;;  %v1065_v56 = vrot.slane %v1057_v50, %v1786_v19 }
 0x167   : > { %1494 = vst.msk [vmem:[%s1842_s20 + $0xe0] sm:$0xff] %vm1465_vm0, %v1327_v42  ;;  %1496 = vst.msk [vmem:[%s1842_s20 + $0xf0] sm:$0xff] %vm1465_vm0, %v1328_v43  ;;  %v778_v46 = vpop.trf.xlu1  ;;  %v1072_v57 = vrot.slane %v1058_v51, %v1786_v19  ;;  %v1329_v58 = vcombine.low %v1848_v20, %v746_v45  ;;  %v1330_v62 = vcombine.high %v1848_v20, %v746_v45 }
 0x168   : > { %v1345_v59 = vcombine.low %v714_v27, %v778_v46  ;;  %v1121_v61 = vcombine.low %v1065_v56, %v1081_v53  ;;  %v1122_v63 = vcombine.high %v1065_v56, %v1081_v53  ;;  %v1346_v2 = vcombine.high %v714_v27, %v778_v46 }
 0x169   : > { %v809_v49 = vpop.trf.xlu0  ;;  %v1137_v0 = vcombine.low %v1072_v57, %v1088_v54  ;;  %v1138_v1 = vcombine.high %v1072_v57, %v1088_v54  ;;  %v1337_v6 = vrot.slane %v1329_v58, %v1786_v19  ;;  %v1344_v10 = vrot.slane %v1330_v62, %v1786_v19 }
 0x16a   : > { %v1353_v7 = vrot.slane %v1345_v59, %v1786_v19  ;;  %v1129_v9 = vrot.slane %v1121_v61, %v1790_v29  ;;  %v1136_v13 = vrot.slane %v1122_v63, %v1790_v29  ;;  %v1360_v16 = vrot.slane %v1346_v2, %v1786_v19 }
 0x16b   : > { %v841_v52 = vpop.trf.xlu1  ;;  %v1145_v14 = vrot.slane %v1137_v0, %v1790_v29  ;;  %v1152_v15 = vrot.slane %v1138_v1, %v1790_v29 }
 0x16c   : > { %v1393_v23 = vcombine.low %v1337_v6, %v1353_v7  ;;  %v1394_v24 = vcombine.high %v1337_v6, %v1353_v7  ;;  %v1409_v33 = vcombine.low %v1344_v10, %v1360_v16  ;;  %v1410_v34 = vcombine.high %v1344_v10, %v1360_v16 }
 0x16d   : > { %v810_v55 = vpop.trf.xlu0 }
 0x16e   : > { %v1401_v56 = vrot.slane %v1393_v23, %v1790_v29  ;;  %v1408_v57 = vrot.slane %v1394_v24, %v1790_v29  ;;  %v1417_v62 = vrot.slane %v1409_v33, %v1790_v29  ;;  %v1424_v63 = vrot.slane %v1410_v34, %v1790_v29 }
 0x16f   : > { %v842_v60 = vpop.trf.xlu1 }
 0x171   : > { %v873_v3 = vpop.trf.xlu0 }
 0x172   : > { %v1089_v4 = vcombine.low %v809_v49, %v873_v3  ;;  %v1090_v5 = vcombine.high %v809_v49, %v873_v3 }
 0x173   : > { %v905_v8 = vpop.trf.xlu1 }
 0x174   : > { %v1105_v11 = vcombine.low %v841_v52, %v905_v8  ;;  %v1106_v12 = vcombine.high %v841_v52, %v905_v8  ;;  %v1097_v18 = vrot.slane %v1089_v4, %v1786_v19  ;;  %v1104_v20 = vrot.slane %v1090_v5, %v1786_v19 }
 0x175   : > { %v874_v17 = vpop.trf.xlu0 }
 0x176   : > { %v1113_v21 = vrot.slane %v1105_v11, %v1786_v19  ;;  %v1120_v22 = vrot.slane %v1106_v12, %v1786_v19  ;;  %v1361_v25 = vcombine.low %v810_v55, %v874_v17  ;;  %v1362_v26 = vcombine.high %v810_v55, %v874_v17 }
 0x177   : > { %v906_v27 = vpop.trf.xlu1 }
 0x178   : > { %v1153_v28 = vcombine.low %v1097_v18, %v1113_v21  ;;  %v1154_v30 = vcombine.high %v1097_v18, %v1113_v21  ;;  %v1169_v31 = vcombine.low %v1104_v20, %v1120_v22  ;;  %v1170_v32 = vcombine.high %v1104_v20, %v1120_v22 }
 0x179   : > { %v1377_v35 = vcombine.low %v842_v60, %v906_v27  ;;  %v1378_v36 = vcombine.high %v842_v60, %v906_v27  ;;  %v1369_v41 = vrot.slane %v1361_v25, %v1786_v19  ;;  %v1376_v42 = vrot.slane %v1362_v26, %v1786_v19 }
 0x17a   : > { %v1161_v37 = vrot.slane %v1153_v28, %v1790_v29  ;;  %v1168_v38 = vrot.slane %v1154_v30, %v1790_v29  ;;  %v1177_v39 = vrot.slane %v1169_v31, %v1790_v29  ;;  %v1184_v40 = vrot.slane %v1170_v32, %v1790_v29 }
 0x17b   : > { %v1385_v43 = vrot.slane %v1377_v35, %v1786_v19  ;;  %v1392_v44 = vrot.slane %v1378_v36, %v1786_v19 }
 0x17c   : > { %v1185_v45 = vcombine.low %v1129_v9, %v1161_v37  ;;  %v1186_v46 = vcombine.high %v1129_v9, %v1161_v37  ;;  %v1187_v47 = vcombine.low %v1136_v13, %v1168_v38  ;;  %v1188_v48 = vcombine.high %v1136_v13, %v1168_v38 }
 0x17d   : > { %v1189_v49 = vcombine.low %v1145_v14, %v1177_v39  ;;  %v1190_v50 = vcombine.high %v1145_v14, %v1177_v39  ;;  %v1191_v51 = vcombine.low %v1152_v15, %v1184_v40  ;;  %v1192_v52 = vcombine.high %v1152_v15, %v1184_v40 }
 0x17e   : > { %1467 = vst.msk [vmem:[%s1842_s20 + $0x8] sm:$0xff] %vm1465_vm0, %v1185_v45  ;;  %1469 = vst.msk [vmem:[%s1842_s20 + $0x18] sm:$0xff] %vm1465_vm0, %v1186_v46  ;;  %v1425_v19 = vcombine.low %v1369_v41, %v1385_v43  ;;  %v1426_v53 = vcombine.high %v1369_v41, %v1385_v43  ;;  %v1441_v54 = vcombine.low %v1376_v42, %v1392_v44 }
 0x17f   : > { %1471 = vst.msk [vmem:[%s1842_s20 + $0x28] sm:$0xff] %vm1465_vm0, %v1187_v47  ;;  %1473 = vst.msk [vmem:[%s1842_s20 + $0x38] sm:$0xff] %vm1465_vm0, %v1188_v48  ;;  %v1442_v55 = vcombine.high %v1376_v42, %v1392_v44 }
 0x180   : > { %1475 = vst.msk [vmem:[%s1842_s20 + $0x48] sm:$0xff] %vm1465_vm0, %v1189_v49  ;;  %1477 = vst.msk [vmem:[%s1842_s20 + $0x58] sm:$0xff] %vm1465_vm0, %v1190_v50  ;;  %v1433_v58 = vrot.slane %v1425_v19, %v1790_v29  ;;  %v1440_v59 = vrot.slane %v1426_v53, %v1790_v29  ;;  %v1449_v60 = vrot.slane %v1441_v54, %v1790_v29 }
 0x181   : > { %1479 = vst.msk [vmem:[%s1842_s20 + $0x68] sm:$0xff] %vm1465_vm0, %v1191_v51  ;;  %1481 = vst.msk [vmem:[%s1842_s20 + $0x78] sm:$0xff] %vm1465_vm0, %v1192_v52  ;;  %v1456_v61 = vrot.slane %v1442_v55, %v1790_v29 }
 0x182   : > { %v1457_v0 = vcombine.low %v1401_v56, %v1433_v58  ;;  %v1458_v1 = vcombine.high %v1401_v56, %v1433_v58  ;;  %v1459_v2 = vcombine.low %v1408_v57, %v1440_v59  ;;  %v1460_v3 = vcombine.high %v1408_v57, %v1440_v59 }
 0x183   : > { %v1461_v4 = vcombine.low %v1417_v62, %v1449_v60  ;;  %v1462_v5 = vcombine.high %v1417_v62, %v1449_v60  ;;  %v1463_v6 = vcombine.low %v1424_v63, %v1456_v61  ;;  %v1464_v7 = vcombine.high %v1424_v63, %v1456_v61 }
 0x184   : > { %1483 = vst.msk [vmem:[%s1842_s20 + $0x88] sm:$0xff] %vm1465_vm0, %v1457_v0  ;;  %1485 = vst.msk [vmem:[%s1842_s20 + $0x98] sm:$0xff] %vm1465_vm0, %v1458_v1 }
 0x185   : > { %1487 = vst.msk [vmem:[%s1842_s20 + $0xa8] sm:$0xff] %vm1465_vm0, %v1459_v2  ;;  %1489 = vst.msk [vmem:[%s1842_s20 + $0xb8] sm:$0xff] %vm1465_vm0, %v1460_v3 }
 0x186   : > { %1491 = vst.msk [vmem:[%s1842_s20 + $0xc8] sm:$0xff] %vm1465_vm0, %v1461_v4  ;;  %1493 = vst.msk [vmem:[%s1842_s20 + $0xd8] sm:$0xff] %vm1465_vm0, %v1462_v5 }
 0x187   : > { %1495 = vst.msk [vmem:[%s1842_s20 + $0xe8] sm:$0xff] %vm1465_vm0, %v1463_v6  ;;  %1497 = vst.msk [vmem:[%s1842_s20 + $0xf8] sm:$0xff] %vm1465_vm0, %v1464_v7 }
 0x188 PF: > { %p11_p9 = scmp.ge.s32.totalorder %s1725_s11, 4   ;;  %s1978_s6 = smov %s1677_s7 }
 0x189   : > { %s1979_s7 = smov %s1681_s8  ;;  %s1980_s8 = smov %s1735_s14 }
 0x18a   : > { %s1981_s9 = smov %s1725_s11  ;;  %13 = sbr.rel (!%p11_p9) target bundleno = 3 (0x3), region = 64 }
 0x18f   :  { %1519 = vsyncpa [#allocation3], 1 }
 0x190   :  { %1521 = vsyncpa [#allocation3 + $0x1], 1 }

</bundles_post_ra>
